<compile_context>
chip_gen: v7x
topology: tpu7x:2x2x1
jax: 0.10.0
libtpu: 0.0.40
codegen_flags: <defaults>
</compile_context>

<pallas_src>
import functools
import numpy as np
import jax
import jax.numpy as jnp
from jax import lax
from jax.experimental import pallas as pl
from jax.experimental.pallas import tpu as pltpu

DELTA = 1e-11


def _round_up(x, m):
    return ((x + m - 1) // m) * m


def _default_tm():
    """M-tile size: 128 rows on v4/v5 (128-wide MXU), 256 on v6e/v7x (256-wide MXU)."""
    try:
        kind = jax.devices()[0].device_kind.lower()
        if "v4" in kind or "v5" in kind:
            return 128
    except Exception:
        pass
    return 256


# ----------------------------------------------------------------------------- kernel
def _osem_subiter_kernel(cf_ref, cb_ref, invn_ref, f_ref, img_ref, scat_ref, out_ref,
                         *, scalar_scatter):
    """One OSEM sub-iteration on one M-tile.

    cf_ref   : [N_pad, Ps_pad]  bf16  system matrix transposed (resident)
    cb_ref   : [Ps_pad, N_pad]  bf16  system matrix            (resident)
    invn_ref : [1, N_pad]       f32   1 / (sum_p C + DELTA)    (resident)
    f_ref    : [TM, N_pad]      f32   current object estimate tile
    img_ref  : [TM, Ps_pad]     f32   measured projections tile (this subset)
    scat_ref : (1,) SMEM scalar OR [TM, Ps_pad] f32 scatter estimate
    out_ref  : [TM, N_pad]      f32   updated object estimate tile
    """
    F = f_ref[...]                                                     # f32 [TM, N]

    # forward projection: fp[m, p] = sum_n F[m, n] * C[p, n]  (bf16 MXU, f32 acc)
    fp = jnp.dot(F.astype(jnp.bfloat16), cf_ref[...],
                 preferred_element_type=jnp.float32)                   # [TM, Ps]

    if scalar_scatter:
        denom = fp + scat_ref[0] + DELTA
    else:
        denom = fp + scat_ref[...] + DELTA

    ratio = img_ref[...] / denom                                       # f32 [TM, Ps]

    # back projection: bp[m, n] = sum_p ratio[m, p] * C[p, n]  (bf16 MXU, f32 acc)
    bp = jnp.dot(ratio.astype(jnp.bfloat16), cb_ref[...],
                 preferred_element_type=jnp.float32)                   # [TM, N]

    # TODO(synk): Bayesian prior term (beta * dV/df) omitted — OSML is run with prior=None.
    out_ref[...] = F * bp * invn_ref[...]


def osem_subiteration(C_f, C_b, inv_norm, F, img_s, scat, *, tm):
    N_pad, Ps_pad = C_f.shape
    M_pad = F.shape[0]
    scalar_scatter = (scat.ndim == 1)

    kernel = functools.partial(_osem_subiter_kernel, scalar_scatter=scalar_scatter)

    in_specs = [
        pl.BlockSpec((N_pad, Ps_pad), lambda i: (0, 0)),   # C_f : resident
        pl.BlockSpec((Ps_pad, N_pad), lambda i: (0, 0)),   # C_b : resident
        pl.BlockSpec((1, N_pad), lambda i: (0, 0)),        # inv_norm : resident
        pl.BlockSpec((tm, N_pad), lambda i: (i, 0)),       # F tile (streamed)
        pl.BlockSpec((tm, Ps_pad), lambda i: (i, 0)),      # img tile (streamed)
    ]
    if scalar_scatter:
        in_specs.append(pl.BlockSpec(memory_space=pltpu.MemorySpace.SMEM))
    else:
        in_specs.append(pl.BlockSpec((tm, Ps_pad), lambda i: (i, 0)))

    # advisory cost estimate
    flops = 4 * M_pad * N_pad * Ps_pad                     # two MXU passes
    bytes_accessed = (C_f.size * 2 + C_b.size * 2 + inv_norm.size * 4
                      + F.size * 4 + img_s.size * 4
                      + (4 if scalar_scatter else scat.size * 4)
                      + M_pad * N_pad * 4)

    # VMEM budget: resident C copies + double-buffered streamed tiles + headroom.
    vmem_need = (2 * (C_f.size * 2 + C_b.size * 2) + N_pad * 4
                 + 2 * (tm * N_pad * 4 + tm * Ps_pad * 4 + tm * N_pad * 4)
                 + (0 if scalar_scatter else 2 * tm * Ps_pad * 4))
    vmem_limit = int(min(max(2 * vmem_need + (4 << 20), 32 << 20), 64 << 20))

    return pl.pallas_call(
        kernel,
        out_shape=jax.ShapeDtypeStruct((M_pad, N_pad), jnp.float32),
        grid=(M_pad // tm,),
        in_specs=in_specs,
        out_specs=pl.BlockSpec((tm, N_pad), lambda i: (i, 0)),
        input_output_aliases={3: 0},                       # update F in place
        compiler_params=pltpu.CompilerParams(
            dimension_semantics=("parallel",),
            vmem_limit_bytes=vmem_limit),
        cost_estimate=pl.CostEstimate(flops=int(flops), transcendentals=0,
                                      bytes_accessed=int(bytes_accessed)),
    )(C_f, C_b, inv_norm, F, img_s, scat)


@functools.partial(jax.jit, static_argnums=(2, 3))
def _run_osem(F, subset_data, n_iters, tm):
    """Full OSEM loop compiled once (glue + all pallas_calls)."""
    for _ in range(n_iters):
        for (C_f, C_b, inv_norm, img_s, scat) in subset_data:
            F = osem_subiteration(C_f, C_b, inv_norm, F, img_s, scat, tm=tm)
    return F


# ----------------------------------------------------------------------------- wrapper
class OSML:
    """JAX/Pallas port of the OSML/OSEM reconstruction loop (prior=None)."""

    def __init__(self, image, system_matrix, object_shape,
                 object_initial=None, scatter=0.0):
        # image:         [B, Lr, Ltheta, Lz]
        # system_matrix: [Ltheta, Lr, Lx*Ly]
        # object_shape:  (Lx, Ly, Lz)
        self.image = jnp.asarray(image, jnp.float32)
        self.C = jnp.asarray(system_matrix, jnp.float32)
        self.Lx, self.Ly, self.Lz = object_shape
        self.B, self.Lr, self.Ltheta, _ = self.image.shape
        self.N = self.Lx * self.Ly
        self.M = self.B * self.Lz

        if object_initial is None:
            # torch.ones(object_meta.shape).unsqueeze(0) broadcast over batch
            self.object_prediction = jnp.ones(
                (self.B, self.Lx, self.Ly, self.Lz), jnp.float32)
        else:
            self.object_prediction = jnp.asarray(object_initial, jnp.float32)

        if np.isscalar(scatter) or getattr(scatter, "ndim", 1) == 0:
            # scalar scatter: keep it a scalar; kernel adds it as an SMEM constant
            self._scalar_scatter = True
            self._scatter_value = float(scatter)
            self.scatter = None
        else:
            self._scalar_scatter = False
            self.scatter = jnp.asarray(scatter, jnp.float32)

    def get_subset_splits(self, n_subsets, n_angles):
        indices = np.arange(n_angles).astype(int)
        return [indices[i::n_subsets] for i in range(n_subsets)]

    # -- glue: [B, Lr, Ltheta, Lz] -> zero-padded [M_pad, Ps_pad] for a given angle subset
    def _image_to_MP(self, img, angle_idx, M_pad, Ps_pad):
        sub = img[:, :, np.asarray(angle_idx), :]           # [B, Lr, nA, Lz]
        sub = jnp.transpose(sub, (0, 3, 2, 1))              # [B, Lz, nA, Lr]
        Ps = sub.shape[2] * sub.shape[3]
        sub = sub.reshape(self.M, Ps)
        return jnp.pad(sub, ((0, M_pad - self.M), (0, Ps_pad - Ps)))

    def forward(self, n_iters, n_subsets):
        subset_indices_array = self.get_subset_splits(n_subsets, self.Ltheta)

        # -------- tile / padding geometry
        N_pad = _round_up(self.N, 128)
        tm_target = _default_tm()
        if self.M <= tm_target:
            tm = _round_up(self.M, 8)
            M_pad = tm
        else:
            tm = tm_target
            M_pad = _round_up(self.M, tm)

        # -------- per-subset constants, computed ONCE (hoisted out of n_iters loop)
        subset_data = []
        for angle_idx in subset_indices_array:
            nA = len(angle_idx)
            Ps = nA * self.Lr
            Ps_pad = _round_up(Ps, 128)

            C_s = self.C[np.asarray(angle_idx)].reshape(Ps, self.N)         # f32 [Ps, N]
            C_pad = jnp.pad(C_s, ((0, Ps_pad - Ps), (0, N_pad - self.N)))   # f32 [Ps_pad, N_pad]

            # normalization (backprojection of ones), hoisted: inv_norm = 1/(sum_p C + DELTA)
            inv_norm = 1.0 / (jnp.sum(C_pad, axis=0, keepdims=True) + DELTA)  # f32 [1, N_pad]

            C_b = C_pad.astype(jnp.bfloat16)                                # [Ps_pad, N_pad]
            C_f = jnp.transpose(C_pad).astype(jnp.bfloat16)                 # [N_pad, Ps_pad]

            img_s = self._image_to_MP(self.image, angle_idx, M_pad, Ps_pad)
            if self._scalar_scatter:
                scat = jnp.asarray([self._scatter_value], jnp.float32)      # (1,) SMEM scalar
            else:
                scat = self._image_to_MP(self.scatter, angle_idx, M_pad, Ps_pad)

            subset_data.append((C_f, C_b, inv_norm, img_s, scat))
        subset_data = tuple(subset_data)

        # -------- object -> padded [M_pad, N_pad] layout
        F = jnp.transpose(self.object_prediction, (0, 3, 1, 2)).reshape(self.M, self.N)
        F = jnp.pad(F, ((0, M_pad - self.M), (0, N_pad - self.N)))

        # -------- run the whole iteration loop under one jit
        F = _run_osem(F, subset_data, int(n_iters), int(tm))

        F = F[:self.M, :self.N]
        self.object_prediction = jnp.transpose(
            F.reshape(self.B, self.Lz, self.Lx, self.Ly), (0, 2, 3, 1))
        return self.object_prediction


# ----------------------------------------------------------------------------- main
if __name__ == "__main__":
    key = jax.random.PRNGKey(0)
    B, Lx, Ly, Lz = 2, 16, 16, 4
    Lr, Ltheta = 16, 8
    N = Lx * Ly

    k1, k2, k3 = jax.random.split(key, 3)

    # deterministic synthetic non-negative system matrix [Ltheta, Lr, N]
    C = jax.random.uniform(k1, (Ltheta, Lr, N), jnp.float32, 0.0, 1.0) * 0.1

    # ground-truth phantom and its noise-free measurement (keeps the MLEM update well posed)
    phantom = jax.random.uniform(k2, (B, Lx, Ly, Lz), jnp.float32, 0.5, 1.5)
    ph_MN = jnp.transpose(phantom, (0, 3, 1, 2)).reshape(B * Lz, N)          # [M, N]
    meas = jnp.einsum('mn,trn->mtr', ph_MN, C)                                # [M, Ltheta, Lr]
    image = jnp.transpose(meas.reshape(B, Lz, Ltheta, Lr), (0, 3, 2, 1))      # [B, Lr, Ltheta, Lz]

    scatter = 0.0

    recon = OSML(image, C, (Lx, Ly, Lz), object_initial=None, scatter=scatter)
    out = recon.forward(n_iters=2, n_subsets=2)
    out = jax.block_until_ready(out)

    assert out.shape == (B, Lx, Ly, Lz)
    assert bool(jnp.all(jnp.isfinite(out)))
    assert bool(jnp.all(out >= 0.0))
    print("KERNEL_OK")
</pallas_src>

<mosaic_0001>
module attributes {stable_mosaic.version = 11 : i64} {
  func.func @_osem_subiter_kernel(%arg0: i32, %arg1: memref<256x128xbf16, #tpu.memory_space<vmem>>, %arg2: memref<128x256xbf16, #tpu.memory_space<vmem>>, %arg3: memref<1x256xf32, #tpu.memory_space<vmem>>, %arg4: memref<8x256xf32, #tpu.memory_space<vmem>>, %arg5: memref<8x128xf32, #tpu.memory_space<vmem>>, %arg6: memref<1xf32, #tpu.memory_space<smem>>, %arg7: memref<8x256xf32, #tpu.memory_space<vmem>>) attributes {dimension_semantics = [#tpu.dimension_semantics<parallel>], iteration_bounds = array<i64: 1>, scalar_prefetch = 0 : i64, scratch_operands = 0 : i64, tpu.core_type = #tpu.core_type<tc>, window_params = [{pipeline_mode = #tpu.pipeline_mode<synchronous>, transform_indices = @transform_0, window_bounds = array<i64: 256, 128>}, {pipeline_mode = #tpu.pipeline_mode<synchronous>, transform_indices = @transform_1, window_bounds = array<i64: 128, 256>}, {pipeline_mode = #tpu.pipeline_mode<synchronous>, transform_indices = @transform_2, window_bounds = array<i64: 1, 256>}, {transform_indices = @transform_3, window_bounds = array<i64: 8, 256>}, {transform_indices = @transform_4, window_bounds = array<i64: 8, 128>}, {transform_indices = @transform_5, window_bounds = array<i64: 1>}, {transform_indices = @transform_6, window_bounds = array<i64: 8, 256>}]} {
    %c0 = arith.constant 0 : index
    %c0_0 = arith.constant 0 : index
    %0 = vector.load %arg4[%c0, %c0_0] : memref<8x256xf32, #tpu.memory_space<vmem>>, vector<8x256xf32>
    %1 = arith.truncf %0 : vector<8x256xf32> to vector<8x256xbf16>
    %c0_1 = arith.constant 0 : index
    %c0_2 = arith.constant 0 : index
    %2 = vector.load %arg1[%c0_1, %c0_2] : memref<256x128xbf16, #tpu.memory_space<vmem>>, vector<256x128xbf16>
    %cst = arith.constant dense<0.000000e+00> : vector<8x128xf32>
    %3 = tpu.matmul %1, %2, %cst {dimension_numbers = #tpu.dot_dimension_numbers<[1], [0], [0], [1], [0, 0, 1, 1], [], []>} : vector<8x256xbf16>, vector<256x128xbf16>, vector<8x128xf32> -> vector<8x128xf32>
    %c0_3 = arith.constant 0 : index
    %4 = memref.load %arg6[%c0_3] : memref<1xf32, #tpu.memory_space<smem>>
    %5 = vector.broadcast %4 : f32 to vector<8x128xf32>
    %6 = arith.addf %3, %5 : vector<8x128xf32>
    %cst_4 = arith.constant 9.99999996E-12 : f32
    %7 = vector.broadcast %cst_4 : f32 to vector<8x128xf32>
    %8 = arith.addf %6, %7 : vector<8x128xf32>
    %c0_5 = arith.constant 0 : index
    %c0_6 = arith.constant 0 : index
    %9 = vector.load %arg5[%c0_5, %c0_6] : memref<8x128xf32, #tpu.memory_space<vmem>>, vector<8x128xf32>
    %10 = arith.divf %9, %8 : vector<8x128xf32>
    %11 = arith.truncf %10 : vector<8x128xf32> to vector<8x128xbf16>
    %c0_7 = arith.constant 0 : index
    %c0_8 = arith.constant 0 : index
    %12 = vector.load %arg2[%c0_7, %c0_8] : memref<128x256xbf16, #tpu.memory_space<vmem>>, vector<128x256xbf16>
    %cst_9 = arith.constant dense<0.000000e+00> : vector<8x256xf32>
    %13 = tpu.matmul %11, %12, %cst_9 {dimension_numbers = #tpu.dot_dimension_numbers<[1], [0], [0], [1], [0, 0, 1, 1], [], []>} : vector<8x128xbf16>, vector<128x256xbf16>, vector<8x256xf32> -> vector<8x256xf32>
    %14 = arith.mulf %0, %13 : vector<8x256xf32>
    %c0_10 = arith.constant 0 : index
    %c0_11 = arith.constant 0 : index
    %15 = vector.load %arg3[%c0_10, %c0_11] : memref<1x256xf32, #tpu.memory_space<vmem>>, vector<1x256xf32>
    %16 = vector.broadcast %15 : vector<1x256xf32> to vector<8x256xf32>
    %17 = arith.mulf %14, %16 : vector<8x256xf32>
    %c0_12 = arith.constant 0 : index
    %c0_13 = arith.constant 0 : index
    %18 = vector.load %arg7[%c0_12, %c0_13] : memref<8x256xf32, #tpu.memory_space<vmem>>, vector<8x256xf32>
    tpu.vector_store %arg7[%c0_12, %c0_13], %17 {strides = array<i32>} : memref<8x256xf32, #tpu.memory_space<vmem>>, vector<8x256xf32>,
    return
  }
  func.func @transform_0(%arg0: i32) -> (i32, i32) {
    %c0_i32 = arith.constant 0 : i32
    %c0_i32_0 = arith.constant 0 : i32
    %c0_i32_1 = arith.constant 0 : i32
    return %c0_i32, %c0_i32_0 : i32, i32
  }
  func.func @transform_1(%arg0: i32) -> (i32, i32) {
    %c0_i32 = arith.constant 0 : i32
    %c0_i32_0 = arith.constant 0 : i32
    %c0_i32_1 = arith.constant 0 : i32
    return %c0_i32, %c0_i32_0 : i32, i32
  }
  func.func @transform_2(%arg0: i32) -> (i32, i32) {
    %c0_i32 = arith.constant 0 : i32
    %c0_i32_0 = arith.constant 0 : i32
    %c0_i32_1 = arith.constant 0 : i32
    return %c0_i32, %c0_i32_0 : i32, i32
  }
  func.func @transform_3(%arg0: i32) -> (i32, i32) {
    %c0_i32 = arith.constant 0 : i32
    %c0_i32_0 = arith.constant 0 : i32
    return %arg0, %c0_i32 : i32, i32
  }
  func.func @transform_4(%arg0: i32) -> (i32, i32) {
    %c0_i32 = arith.constant 0 : i32
    %c0_i32_0 = arith.constant 0 : i32
    return %arg0, %c0_i32 : i32, i32
  }
  func.func @transform_5(%arg0: i32) -> i32 {
    %c0_i32 = arith.constant 0 : i32
    %c0_i32_0 = arith.constant 0 : i32
    return %c0_i32 : i32
  }
  func.func @transform_6(%arg0: i32) -> (i32, i32) {
    %c0_i32 = arith.constant 0 : i32
    %c0_i32_0 = arith.constant 0 : i32
    return %arg0, %c0_i32 : i32, i32
  }
}

module attributes {stable_mosaic.version = 11 : i64} {
  func.func @_osem_subiter_kernel(%arg0: i32, %arg1: memref<256x128xbf16, #tpu.memory_space<vmem>>, %arg2: memref<128x256xbf16, #tpu.memory_space<vmem>>, %arg3: memref<1x256xf32, #tpu.memory_space<vmem>>, %arg4: memref<8x256xf32, #tpu.memory_space<vmem>>, %arg5: memref<8x128xf32, #tpu.memory_space<vmem>>, %arg6: memref<1xf32, #tpu.memory_space<smem>>, %arg7: memref<8x256xf32, #tpu.memory_space<vmem>>) attributes {dimension_semantics = [#tpu.dimension_semantics<parallel>], iteration_bounds = array<i64: 1>, scalar_prefetch = 0 : i64, scratch_operands = 0 : i64, tpu.core_type = #tpu.core_type<tc>, window_params = [{pipeline_mode = #tpu.pipeline_mode<synchronous>, transform_indices = @transform_0, window_bounds = array<i64: 256, 128>}, {pipeline_mode = #tpu.pipeline_mode<synchronous>, transform_indices = @transform_1, window_bounds = array<i64: 128, 256>}, {pipeline_mode = #tpu.pipeline_mode<synchronous>, transform_indices = @transform_2, window_bounds = array<i64: 1, 256>}, {transform_indices = @transform_3, window_bounds = array<i64: 8, 256>}, {transform_indices = @transform_4, window_bounds = array<i64: 8, 128>}, {transform_indices = @transform_5, window_bounds = array<i64: 1>}, {transform_indices = @transform_6, window_bounds = array<i64: 8, 256>}]} {
    %c0 = arith.constant 0 : index
    %c0_0 = arith.constant 0 : index
    %0 = vector.load %arg4[%c0, %c0_0] : memref<8x256xf32, #tpu.memory_space<vmem>>, vector<8x256xf32>
    %1 = arith.truncf %0 : vector<8x256xf32> to vector<8x256xbf16>
    %c0_1 = arith.constant 0 : index
    %c0_2 = arith.constant 0 : index
    %2 = vector.load %arg1[%c0_1, %c0_2] : memref<256x128xbf16, #tpu.memory_space<vmem>>, vector<256x128xbf16>
    %cst = arith.constant dense<0.000000e+00> : vector<8x128xf32>
    %3 = tpu.matmul %1, %2, %cst {dimension_numbers = #tpu.dot_dimension_numbers<[1], [0], [0], [1], [0, 0, 1, 1], [], []>} : vector<8x256xbf16>, vector<256x128xbf16>, vector<8x128xf32> -> vector<8x128xf32>
    %c0_3 = arith.constant 0 : index
    %4 = memref.load %arg6[%c0_3] : memref<1xf32, #tpu.memory_space<smem>>
    %5 = vector.broadcast %4 : f32 to vector<8x128xf32>
    %6 = arith.addf %3, %5 : vector<8x128xf32>
    %cst_4 = arith.constant 9.99999996E-12 : f32
    %7 = vector.broadcast %cst_4 : f32 to vector<8x128xf32>
    %8 = arith.addf %6, %7 : vector<8x128xf32>
    %c0_5 = arith.constant 0 : index
    %c0_6 = arith.constant 0 : index
    %9 = vector.load %arg5[%c0_5, %c0_6] : memref<8x128xf32, #tpu.memory_space<vmem>>, vector<8x128xf32>
    %10 = arith.divf %9, %8 : vector<8x128xf32>
    %11 = arith.truncf %10 : vector<8x128xf32> to vector<8x128xbf16>
    %c0_7 = arith.constant 0 : index
    %c0_8 = arith.constant 0 : index
    %12 = vector.load %arg2[%c0_7, %c0_8] : memref<128x256xbf16, #tpu.memory_space<vmem>>, vector<128x256xbf16>
    %cst_9 = arith.constant dense<0.000000e+00> : vector<8x256xf32>
    %13 = tpu.matmul %11, %12, %cst_9 {dimension_numbers = #tpu.dot_dimension_numbers<[1], [0], [0], [1], [0, 0, 1, 1], [], []>} : vector<8x128xbf16>, vector<128x256xbf16>, vector<8x256xf32> -> vector<8x256xf32>
    %14 = arith.mulf %0, %13 : vector<8x256xf32>
    %c0_10 = arith.constant 0 : index
    %c0_11 = arith.constant 0 : index
    %15 = vector.load %arg3[%c0_10, %c0_11] : memref<1x256xf32, #tpu.memory_space<vmem>>, vector<1x256xf32>
    %16 = vector.broadcast %15 : vector<1x256xf32> to vector<8x256xf32>
    %17 = arith.mulf %14, %16 : vector<8x256xf32>
    %c0_12 = arith.constant 0 : index
    %c0_13 = arith.constant 0 : index
    %18 = vector.load %arg7[%c0_12, %c0_13] : memref<8x256xf32, #tpu.memory_space<vmem>>, vector<8x256xf32>
    tpu.vector_store %arg7[%c0_12, %c0_13], %17 {strides = array<i32>} : memref<8x256xf32, #tpu.memory_space<vmem>>, vector<8x256xf32>,
    return
  }
  func.func @transform_0(%arg0: i32) -> (i32, i32) {
    %c0_i32 = arith.constant 0 : i32
    %c0_i32_0 = arith.constant 0 : i32
    %c0_i32_1 = arith.constant 0 : i32
    return %c0_i32, %c0_i32_0 : i32, i32
  }
  func.func @transform_1(%arg0: i32) -> (i32, i32) {
    %c0_i32 = arith.constant 0 : i32
    %c0_i32_0 = arith.constant 0 : i32
    %c0_i32_1 = arith.constant 0 : i32
    return %c0_i32, %c0_i32_0 : i32, i32
  }
  func.func @transform_2(%arg0: i32) -> (i32, i32) {
    %c0_i32 = arith.constant 0 : i32
    %c0_i32_0 = arith.constant 0 : i32
    %c0_i32_1 = arith.constant 0 : i32
    return %c0_i32, %c0_i32_0 : i32, i32
  }
  func.func @transform_3(%arg0: i32) -> (i32, i32) {
    %c0_i32 = arith.constant 0 : i32
    %c0_i32_0 = arith.constant 0 : i32
    return %arg0, %c0_i32 : i32, i32
  }
  func.func @transform_4(%arg0: i32) -> (i32, i32) {
    %c0_i32 = arith.constant 0 : i32
    %c0_i32_0 = arith.constant 0 : i32
    return %arg0, %c0_i32 : i32, i32
  }
  func.func @transform_5(%arg0: i32) -> i32 {
    %c0_i32 = arith.constant 0 : i32
    %c0_i32_0 = arith.constant 0 : i32
    return %c0_i32 : i32
  }
  func.func @transform_6(%arg0: i32) -> (i32, i32) {
    %c0_i32 = arith.constant 0 : i32
    %c0_i32_0 = arith.constant 0 : i32
    return %arg0, %c0_i32 : i32, i32
  }
}

module attributes {stable_mosaic.version = 11 : i64} {
  func.func @_osem_subiter_kernel(%arg0: i32, %arg1: memref<256x128xbf16, #tpu.memory_space<vmem>>, %arg2: memref<128x256xbf16, #tpu.memory_space<vmem>>, %arg3: memref<1x256xf32, #tpu.memory_space<vmem>>, %arg4: memref<8x256xf32, #tpu.memory_space<vmem>>, %arg5: memref<8x128xf32, #tpu.memory_space<vmem>>, %arg6: memref<1xf32, #tpu.memory_space<smem>>, %arg7: memref<8x256xf32, #tpu.memory_space<vmem>>) attributes {dimension_semantics = [#tpu.dimension_semantics<parallel>], iteration_bounds = array<i64: 1>, scalar_prefetch = 0 : i64, scratch_operands = 0 : i64, tpu.core_type = #tpu.core_type<tc>, window_params = [{pipeline_mode = #tpu.pipeline_mode<synchronous>, transform_indices = @transform_0, window_bounds = array<i64: 256, 128>}, {pipeline_mode = #tpu.pipeline_mode<synchronous>, transform_indices = @transform_1, window_bounds = array<i64: 128, 256>}, {pipeline_mode = #tpu.pipeline_mode<synchronous>, transform_indices = @transform_2, window_bounds = array<i64: 1, 256>}, {transform_indices = @transform_3, window_bounds = array<i64: 8, 256>}, {transform_indices = @transform_4, window_bounds = array<i64: 8, 128>}, {transform_indices = @transform_5, window_bounds = array<i64: 1>}, {transform_indices = @transform_6, window_bounds = array<i64: 8, 256>}]} {
    %c0 = arith.constant 0 : index
    %c0_0 = arith.constant 0 : index
    %0 = vector.load %arg4[%c0, %c0_0] : memref<8x256xf32, #tpu.memory_space<vmem>>, vector<8x256xf32>
    %1 = arith.truncf %0 : vector<8x256xf32> to vector<8x256xbf16>
    %c0_1 = arith.constant 0 : index
    %c0_2 = arith.constant 0 : index
    %2 = vector.load %arg1[%c0_1, %c0_2] : memref<256x128xbf16, #tpu.memory_space<vmem>>, vector<256x128xbf16>
    %cst = arith.constant dense<0.000000e+00> : vector<8x128xf32>
    %3 = tpu.matmul %1, %2, %cst {dimension_numbers = #tpu.dot_dimension_numbers<[1], [0], [0], [1], [0, 0, 1, 1], [], []>} : vector<8x256xbf16>, vector<256x128xbf16>, vector<8x128xf32> -> vector<8x128xf32>
    %c0_3 = arith.constant 0 : index
    %4 = memref.load %arg6[%c0_3] : memref<1xf32, #tpu.memory_space<smem>>
    %5 = vector.broadcast %4 : f32 to vector<8x128xf32>
    %6 = arith.addf %3, %5 : vector<8x128xf32>
    %cst_4 = arith.constant 9.99999996E-12 : f32
    %7 = vector.broadcast %cst_4 : f32 to vector<8x128xf32>
    %8 = arith.addf %6, %7 : vector<8x128xf32>
    %c0_5 = arith.constant 0 : index
    %c0_6 = arith.constant 0 : index
    %9 = vector.load %arg5[%c0_5, %c0_6] : memref<8x128xf32, #tpu.memory_space<vmem>>, vector<8x128xf32>
    %10 = arith.divf %9, %8 : vector<8x128xf32>
    %11 = arith.truncf %10 : vector<8x128xf32> to vector<8x128xbf16>
    %c0_7 = arith.constant 0 : index
    %c0_8 = arith.constant 0 : index
    %12 = vector.load %arg2[%c0_7, %c0_8] : memref<128x256xbf16, #tpu.memory_space<vmem>>, vector<128x256xbf16>
    %cst_9 = arith.constant dense<0.000000e+00> : vector<8x256xf32>
    %13 = tpu.matmul %11, %12, %cst_9 {dimension_numbers = #tpu.dot_dimension_numbers<[1], [0], [0], [1], [0, 0, 1, 1], [], []>} : vector<8x128xbf16>, vector<128x256xbf16>, vector<8x256xf32> -> vector<8x256xf32>
    %14 = arith.mulf %0, %13 : vector<8x256xf32>
    %c0_10 = arith.constant 0 : index
    %c0_11 = arith.constant 0 : index
    %15 = vector.load %arg3[%c0_10, %c0_11] : memref<1x256xf32, #tpu.memory_space<vmem>>, vector<1x256xf32>
    %16 = vector.broadcast %15 : vector<1x256xf32> to vector<8x256xf32>
    %17 = arith.mulf %14, %16 : vector<8x256xf32>
    %c0_12 = arith.constant 0 : index
    %c0_13 = arith.constant 0 : index
    %18 = vector.load %arg7[%c0_12, %c0_13] : memref<8x256xf32, #tpu.memory_space<vmem>>, vector<8x256xf32>
    tpu.vector_store %arg7[%c0_12, %c0_13], %17 {strides = array<i32>} : memref<8x256xf32, #tpu.memory_space<vmem>>, vector<8x256xf32>,
    return
  }
  func.func @transform_0(%arg0: i32) -> (i32, i32) {
    %c0_i32 = arith.constant 0 : i32
    %c0_i32_0 = arith.constant 0 : i32
    %c0_i32_1 = arith.constant 0 : i32
    return %c0_i32, %c0_i32_0 : i32, i32
  }
  func.func @transform_1(%arg0: i32) -> (i32, i32) {
    %c0_i32 = arith.constant 0 : i32
    %c0_i32_0 = arith.constant 0 : i32
    %c0_i32_1 = arith.constant 0 : i32
    return %c0_i32, %c0_i32_0 : i32, i32
  }
  func.func @transform_2(%arg0: i32) -> (i32, i32) {
    %c0_i32 = arith.constant 0 : i32
    %c0_i32_0 = arith.constant 0 : i32
    %c0_i32_1 = arith.constant 0 : i32
    return %c0_i32, %c0_i32_0 : i32, i32
  }
  func.func @transform_3(%arg0: i32) -> (i32, i32) {
    %c0_i32 = arith.constant 0 : i32
    %c0_i32_0 = arith.constant 0 : i32
    return %arg0, %c0_i32 : i32, i32
  }
  func.func @transform_4(%arg0: i32) -> (i32, i32) {
    %c0_i32 = arith.constant 0 : i32
    %c0_i32_0 = arith.constant 0 : i32
    return %arg0, %c0_i32 : i32, i32
  }
  func.func @transform_5(%arg0: i32) -> i32 {
    %c0_i32 = arith.constant 0 : i32
    %c0_i32_0 = arith.constant 0 : i32
    return %c0_i32 : i32
  }
  func.func @transform_6(%arg0: i32) -> (i32, i32) {
    %c0_i32 = arith.constant 0 : i32
    %c0_i32_0 = arith.constant 0 : i32
    return %arg0, %c0_i32 : i32, i32
  }
}

</mosaic_0001>

<bundles_post_ra>
// kernel: _run_osem.7
= control target key start
LH: loop header
LB: loop body
LE: loop exit
PB: predicated region body
PF: predicated region fallthrough
CT: control target
= control target key end

     0   :  { %12 = vsyncpa [#allocation4], 0  ;;  %s706_s0 = inlined_call_operand.vmem [shape: bf16[256,128], index: 0, kind: input, shape index: {}]   ;;  %s707_s1 = inlined_call_operand.vmem [shape: bf16[128,256], index: 1, kind: input, shape index: {}]   ;;  %s708_s2 = inlined_call_operand.vmem [shape: f32[1,256], index: 2, kind: input, shape index: {}]   ;;  %s709_s3 = inlined_call_operand.hbm [shape: f32[8,256], index: 3, kind: input, shape index: {}, may-alias: {3,6}]   ;;  %s710_s4 = inlined_call_operand.vmem [shape: f32[8,128], index: 4, kind: input, shape index: {}]   ;;  %s711_s5 = inlined_call_operand.<no memory space> [shape: f32[1], index: 5, kind: input, shape index: {}]   ;;  %s712_s6 = inlined_call_operand.hbm [shape: f32[8,256], index: 6, kind: output, shape index: {}, may-alias: {3,6}]  }
   0x1   :  { %13 = vsyncpa [#allocation5], 0  ;;  %s534_s21 = smov [#allocation3]   ;;  %s486_s25 = scalar_lea.hbm %s709_s3, 256 }
   0x2   :  { %s26_s22 = sshll.u32 %s534_s21, 4  ;;  %p487_p0 = scmp.ne.s32.totalorder %s709_s3, %s486_s25  ;;  %s27_s22 = int_to_ptr.vmem [resolvable:$true] %s26_s22 }
   0x3   :  { %p490_p1 = scmp.lt.u32.totalorder %s486_s25, %s709_s3 }
   0x5   :  { %p492_p2 = pnand %p490_p1, %p487_p0 }
   0x7   :  { %495 = shalt.err (!%p492_p2)
}
   0x8   :  { %s496_s30 = scalar_lea.vmem %s27_s22, 256  ;;  %p501_p4 = scmp.lt.s32.totalorder %s27_s22, %s27_s22 }
   0x9   :  { %p497_p3 = scmp.ne.s32.totalorder %s27_s22, %s496_s30  ;;  %p502_p5 = scmp.lt.s32.totalorder %s496_s30, %s496_s30 }
   0xb   :  { %p503_p6 = por %p502_p5, %p501_p4 }
   0xd   :  { %p504_p7 = pnand %p503_p6, %p497_p3 }
   0xf   :  { %507 = shalt.err (!%p504_p7)
}
  0x10   :  { %29 = dma.hbm_to_vmem [thread:$0]  %s709_s3, 256, %s27_s22, [#allocation4]  }
  0x11   :  { %530 = dma.done.wait [#allocation4], 256  }
  0x12   :  { %531 = vsyncadd [#allocation4], 4294967040  ;;  %v444_v0 = vld [vmem:[%s706_s0 + $0x40] sm:$0xff]   ;;  %v446_v2 = vld [vmem:[%s706_s0 + $0x48] sm:$0xff]   ;;  %v535_v33 = vmov 0   ;;  %v75_v38 = vstv %s711_s5  ;;  %v358_v49 = vlaneseq  ;;  %s536_s25 = smov [#allocation6]  }
  0x13   :  { %v445_v1 = vld [vmem:[%s706_s0] sm:$0xff]   ;;  %419 = vmatprep.subr.bf16.mxu0 %v444_v0  ;;  %v447_v3 = vld [vmem:[%s706_s0 + $0x8] sm:$0xff]   ;;  %v448_v4 = vld [vmem:[%s706_s0 + $0x50] sm:$0xff]   ;;  %345 = vmatprep.mubr.bf16.mxu1 %v535_v33  ;;  %s378_s26 = sshll.u32 %s536_s25, 4  ;;  %s379_s26 = int_to_ptr.vmem [resolvable:$true] %s378_s26 }
  0x14   :  { %420 = vmatpush3.bf16.msra.mxu0 %v445_v1  ;;  %v449_v5 = vld [vmem:[%s706_s0 + $0x10] sm:$0xff]   ;;  %v450_v6 = vld [vmem:[%s706_s0 + $0x58] sm:$0xff]   ;;  %v452_v8 = vld [vmem:[%s706_s0 + $0x60] sm:$0xff]   ;;  %v359_v50 = vshrl.u32 %v358_v49, 7  ;;  %p513_p9 = scmp.lt.s32.totalorder %s379_s26, %s379_s26 }
  0x15   :  { %421 = vmatprep.subr.bf16.mxu0 %v446_v2  ;;  %v451_v7 = vld [vmem:[%s706_s0 + $0x18] sm:$0xff]   ;;  %v453_v9 = vld [vmem:[%s706_s0 + $0x20] sm:$0xff]   ;;  %v454_v10 = vld [vmem:[%s706_s0 + $0x68] sm:$0xff]  }
  0x16   :  { %v617_v11 = vld [vmem:[#allocation3 + $0x8] sm:$0xff]  ;;  %v456_v16 = vld [vmem:[%s706_s0 + $0x70] sm:$0xff]   ;;  %v458_v21 = vld [vmem:[%s706_s0 + $0x78] sm:$0xff]   ;;  %v360_v51 = vsub.s32 0, %v359_v50  ;;  %v364_v53 = vsub.s32 1, %v359_v50 }
  0x17   :  { %v455_v12 = vld [vmem:[%s706_s0 + $0x28] sm:$0xff]   ;;  %v41_v13 = vpack.c.bf16 %v617_v11, %v617_v11  ;;  %v463_v17 = vld [vmem:[%s707_s1 + $0x14] ss:$8 sps:$4 sm:$0xff]   ;;  %v465_v18 = vld [vmem:[%s707_s1 + $0x10] ss:$8 sps:$4 sm:$0xff]  }
  0x18   :  { %422 = vmatpush3.bf16.msra.mxu0 %v447_v3  ;;  %v460_v14 = vld [vmem:[%s707_s1 + $0x4] ss:$8 sps:$4 sm:$0xff]   ;;  %v462_v15 = vld [vmem:[%s707_s1] ss:$8 sps:$4 sm:$0xff]   ;;  %v457_v20 = vld [vmem:[%s706_s0 + $0x30] sm:$0xff]  }
  0x19   :  { %423 = vmatprep.subr.bf16.mxu0 %v448_v4  ;;  %204 = vmatprep.mubr.bf16.mxu0 %v41_v13  ;;  %v466_v19 = vld [vmem:[%s707_s1 + $0x24] ss:$8 sps:$4 sm:$0xff]   ;;  %v459_v22 = vld [vmem:[%s706_s0 + $0x38] sm:$0xff]   ;;  %v468_v25 = vld [vmem:[%s707_s1 + $0x20] ss:$8 sps:$4 sm:$0xff]  }
  0x1a   :  { %313 = vmatprep.subr.bf16.mxu1 %v460_v14  ;;  %v38_v23 = vld [vmem:[#allocation3] sm:$0xff]  ;;  %v469_v26 = vld [vmem:[%s707_s1 + $0x34] ss:$8 sps:$4 sm:$0xff]   ;;  %v471_v27 = vld [vmem:[%s707_s1 + $0x30] ss:$8 sps:$4 sm:$0xff]  }
  0x1b   :  { %314 = vmatpush1.bf16.msra.mxu1 %v462_v15  ;;  %v40_v24 = vpack.c.bf16 %v38_v23, %v38_v23  ;;  %v472_v28 = vld [vmem:[%s707_s1 + $0x44] ss:$8 sps:$4 sm:$0xff]   ;;  %v474_v29 = vld [vmem:[%s707_s1 + $0x40] ss:$8 sps:$4 sm:$0xff]   ;;  %v475_v30 = vld [vmem:[%s707_s1 + $0x54] ss:$8 sps:$4 sm:$0xff]  }
  0x1c   :  { %424 = vmatpush3.bf16.msra.mxu0 %v449_v5  ;;  %315 = vmatprep.subr.bf16.mxu1 %v463_v17  ;;  %v477_v31 = vld [vmem:[%s707_s1 + $0x50] ss:$8 sps:$4 sm:$0xff]   ;;  %v478_v32 = vld [vmem:[%s707_s1 + $0x64] ss:$8 sps:$4 sm:$0xff]   ;;  %v480_v34 = vld [vmem:[%s707_s1 + $0x60] ss:$8 sps:$4 sm:$0xff]  }
  0x1d   :  { %425 = vmatprep.subr.bf16.mxu0 %v450_v6  ;;  %v481_v35 = vld [vmem:[%s707_s1 + $0x74] ss:$8 sps:$4 sm:$0xff]   ;;  %v483_v36 = vld [vmem:[%s707_s1 + $0x70] ss:$8 sps:$4 sm:$0xff]   ;;  %v213_v45 = vld [vmem:[%s710_s4] sm:$0xff]  ;;  %s508_s4 = scalar_lea.vmem %s379_s26, 256 }
  0x1e   :  { %v356_v52 = vld [vmem:[%s708_s2] sm:$0x3]  ;;  %p509_p8 = scmp.ne.s32.totalorder %s379_s26, %s508_s4  ;;  %p514_p10 = scmp.lt.s32.totalorder %s508_s4, %s508_s4 }
  0x1f   :  { %316 = vmatpush1.bf16.msra.mxu1 %v465_v18  ;;  %v361_v54 = vrot.slane %v356_v52, %v360_v51  ;;  %v365_v56 = vrot.slane %v356_v52, %v364_v53 }
  0x20   :  { %426 = vmatpush3.bf16.msra.mxu0 %v451_v7  ;;  %317 = vmatprep.subr.bf16.mxu1 %v466_v19  ;;  %p515_p11 = por %p514_p10, %p513_p9 }
  0x21   :  { %427 = vmatprep.subr.bf16.mxu0 %v452_v8 }
  0x22   :  { %p516_p12 = pnand %p515_p11, %p509_p8 }
  0x23   :  { %318 = vmatpush1.bf16.msra.mxu1 %v468_v25 }
  0x24   :  { %428 = vmatpush3.bf16.msra.mxu0 %v453_v9  ;;  %319 = vmatprep.subr.bf16.mxu1 %v469_v26 }
  0x25   :  { %429 = vmatprep.subr.bf16.mxu0 %v454_v10 }
  0x27   :  { %320 = vmatpush1.bf16.msra.mxu1 %v471_v27 }
  0x28   :  { %430 = vmatpush3.bf16.msra.mxu0 %v455_v12  ;;  %321 = vmatprep.subr.bf16.mxu1 %v472_v28 }
  0x29   :  { %431 = vmatprep.subr.bf16.mxu0 %v456_v16 }
  0x2b   :  { %322 = vmatpush1.bf16.msra.mxu1 %v474_v29 }
  0x2c   :  { %432 = vmatpush3.bf16.msra.mxu0 %v457_v20  ;;  %323 = vmatprep.subr.bf16.mxu1 %v475_v30 }
  0x2d   :  { %433 = vmatprep.subr.bf16.mxu0 %v458_v21 }
  0x2f   :  { %324 = vmatpush1.bf16.msra.mxu1 %v477_v31 }
  0x30   :  { %434 = vmatpush3.bf16.msra.mxu0 %v459_v22  ;;  %325 = vmatprep.subr.bf16.mxu1 %v478_v32 }
  0x33   :  { %205 = vmatmul.mubr.bf16.vlgmr.msra.gmra.mrb[0].mxu0 %v40_v24  ;;  %326 = vmatpush1.bf16.msra.mxu1 %v480_v34 }
  0x34   :  { %327 = vmatprep.subr.bf16.mxu1 %v481_v35 }
  0x37   :  { %328 = vmatpush1.bf16.msra.mxu1 %v483_v36 }
 0x106   :  { %v435_v37 = vpop.f32.mrb[0].mxu0 }
 0x107   :  { %v436_v39 = vpop.f32.mrb[1].mxu0 }
 0x108   :  { %v437_v40 = vadd.f32 %v436_v39, %v435_v37  ;;  %v438_v41 = vpop.f32.mrb[2].mxu0 }
 0x109   :  { %v439_v42 = vpop.f32.mrb[3].mxu0 }
 0x10a   :  { %v207_v43 = vadd.f32 %v437_v40, %v75_v38 }
 0x10c   :  { %v212_v44 = vadd.f32 1e-11, %v207_v43 }
 0x10e   :  { %484 = vrcp.f32 %v212_v44 }
 0x118   :  { %v485_v46 = vpop.eup %484 }
 0x119   :  { %v215_v47 = vmul.f32 %v485_v46, %v213_v45 }
 0x11b   :  { %v216_v48 = vpack.c.bf16 %v215_v47, %v215_v47 }
 0x11d   :  { %346 = vmatmul.mubr.bf16.vlgmr.msra.gmra.mrb[0].mxu1 %v216_v48 }
 0x1f0   :  { %v347_v55 = vpop.f32.mrb[0].mxu1 }
 0x1f1   :  { %v354_v57 = vmul.f32 %v347_v55, %v38_v23  ;;  %v349_v58 = vpop.f32.mrb[1].mxu1 }
 0x1f2   :  { %v355_v59 = vmul.f32 %v349_v58, %v617_v11  ;;  %v351_v60 = vpop.f32.mrb[2].mxu1 }
 0x1f3   :  { %v368_v61 = vmul.f32 %v361_v54, %v354_v57  ;;  %v352_v62 = vpop.f32.mrb[3].mxu1 }
 0x1f4   :  { %v369_v63 = vmul.f32 %v365_v56, %v355_v59 }
 0x1f5   :  { %370 = vst [vmem:[#allocation6] sm:$0xff] %v368_v61 }
 0x1f6   :  { %371 = vst [vmem:[#allocation6 + $0x8] sm:$0xff] %v369_v63 }
 0x1f7   :  { %519 = shalt.err (!%p516_p12)
}
 0x1f8   :  { %s520_s28 = scalar_lea.hbm %s712_s6, 256 }
 0x1f9   :  { %p521_p13 = scmp.ne.s32.totalorder %s712_s6, %s520_s28  ;;  %p524_p0 = scmp.lt.u32.totalorder %s520_s28, %s712_s6 }
 0x1fb   :  { %p526_p1 = pnand %p524_p0, %p521_p13 }
 0x1fd   :  { %529 = shalt.err (!%p526_p1)
}
 0x1fe   :  { %381 = dma.vmem_to_hbm [thread:$0]  %s379_s26, 256, %s712_s6, [#allocation5]  }
 0x1ff   :  { %532 = dma.done.wait [#allocation5], 256  }
 0x200   :  { %533 = vsyncadd [#allocation5], 4294967040 }
 0x201   :  { %385 = vsyncpa [#allocation4], 1 }
 0x202   :  { %386 = vsyncpa [#allocation5], 1 }

// kernel: _run_osem.4
= control target key start
LH: loop header
LB: loop body
LE: loop exit
PB: predicated region body
PF: predicated region fallthrough
CT: control target
= control target key end

     0   :  { %12 = vsyncpa [#allocation4], 0  ;;  %s636_s0 = inlined_call_operand.hbm [shape: bf16[256,128], index: 0, kind: input, shape index: {}]   ;;  %s637_s1 = inlined_call_operand.hbm [shape: bf16[128,256], index: 1, kind: input, shape index: {}]   ;;  %s638_s2 = inlined_call_operand.vmem [shape: f32[1,256], index: 2, kind: input, shape index: {}]   ;;  %s639_s3 = inlined_call_operand.vmem [shape: f32[8,256], index: 3, kind: input, shape index: {}, may-alias: {3,6}]   ;;  %s640_s4 = inlined_call_operand.vmem [shape: f32[8,128], index: 4, kind: input, shape index: {}]   ;;  %s641_s5 = inlined_call_operand.<no memory space> [shape: f32[1], index: 5, kind: input, shape index: {}]   ;;  %s642_s6 = inlined_call_operand.vmem [shape: f32[8,256], index: 6, kind: output, shape index: {}, may-alias: {3,6}]  }
   0x1   :  { %13 = vsyncpa [#allocation6], 0  ;;  %s544_s21 = smov [#allocation3]   ;;  %s496_s25 = scalar_lea.hbm %s636_s0, 2048 }
   0x2   :  { %s19_s22 = sshll.u32 %s544_s21, 4  ;;  %p497_p0 = scmp.ne.s32.totalorder %s636_s0, %s496_s25  ;;  %s20_s22 = int_to_ptr.vmem [resolvable:$true] %s19_s22 }
   0x3   :  { %p500_p1 = scmp.lt.u32.totalorder %s496_s25, %s636_s0 }
   0x5   :  { %p502_p2 = pnand %p500_p1, %p497_p0 }
   0x7   :  { %505 = shalt.err (!%p502_p2)
}
   0x8   :  { %s506_s30 = scalar_lea.vmem %s20_s22, 2048  ;;  %p511_p4 = scmp.lt.s32.totalorder %s20_s22, %s20_s22 }
   0x9   :  { %p507_p3 = scmp.ne.s32.totalorder %s20_s22, %s506_s30  ;;  %p512_p5 = scmp.lt.s32.totalorder %s506_s30, %s506_s30 }
   0xb   :  { %p513_p6 = por %p512_p5, %p511_p4 }
   0xd   :  { %p514_p7 = pnand %p513_p6, %p507_p3 }
   0xf   :  { %517 = shalt.err (!%p514_p7)
}
  0x10   :  { %s545_s7 = smov 64   ;;  %s546_s8 = smov 4  }
  0x11   :  { %25 = dma.hbm_to_vmem [thread:$0]  %s636_s0, 2048, %s20_s22, [#allocation4], %s545_s7, %s545_s7, %s546_s8  }
  0x12   :  { %s547_s11 = smov [#allocation5]   ;;  %s518_s15 = scalar_lea.hbm %s637_s1, 2048 }
  0x13   :  { %s31_s12 = sshll.u32 %s547_s11, 4  ;;  %p519_p8 = scmp.ne.s32.totalorder %s637_s1, %s518_s15  ;;  %s32_s12 = int_to_ptr.vmem [resolvable:$true] %s31_s12 }
  0x14   :  { %p522_p9 = scmp.lt.u32.totalorder %s518_s15, %s637_s1 }
  0x16   :  { %p524_p10 = pnand %p522_p9, %p519_p8 }
  0x18   :  { %527 = shalt.err (!%p524_p10)
}
  0x19   :  { %s528_s20 = scalar_lea.vmem %s32_s12, 2048  ;;  %p533_p12 = scmp.lt.s32.totalorder %s32_s12, %s32_s12 }
  0x1a   :  { %p529_p11 = scmp.ne.s32.totalorder %s32_s12, %s528_s20  ;;  %p534_p13 = scmp.lt.s32.totalorder %s528_s20, %s528_s20 }
  0x1c   :  { %p535_p0 = por %p534_p13, %p533_p12 }
  0x1e   :  { %p536_p1 = pnand %p535_p0, %p529_p11 }
  0x20   :  { %539 = shalt.err (!%p536_p1)
}
  0x21   :  { %s548_s0 = smov 128   ;;  %s549_s21 = smov 8  }
  0x22   :  { %37 = dma.hbm_to_vmem [thread:$0]  %s637_s1, 2048, %s32_s12, [#allocation6], %s548_s0, %s548_s0, %s549_s21  }
  0x23   :  { %540 = dma.done.wait [#allocation4], 2048  }
  0x24   :  { %541 = vsyncadd [#allocation4], 4294965248 }
  0x25   :  { %542 = dma.done.wait [#allocation6], 2048  }
  0x26   :  { %543 = vsyncadd [#allocation6], 4294965248  ;;  %v454_v0 = vld [vmem:[#allocation3 + $0x40] sm:$0xff]   ;;  %v456_v2 = vld [vmem:[#allocation3 + $0x48] sm:$0xff]   ;;  %v550_v33 = vmov 0   ;;  %v90_v38 = vstv %s641_s5  ;;  %v373_v49 = vlaneseq }
  0x27   :  { %v455_v1 = vld [vmem:[#allocation3] sm:$0xff]   ;;  %425 = vmatprep.subr.bf16.mxu0 %v454_v0  ;;  %v457_v3 = vld [vmem:[#allocation3 + $0x8] sm:$0xff]   ;;  %v458_v4 = vld [vmem:[#allocation3 + $0x50] sm:$0xff]   ;;  %360 = vmatprep.mubr.bf16.mxu1 %v550_v33 }
  0x28   :  { %426 = vmatpush3.bf16.msra.mxu0 %v455_v1  ;;  %v459_v5 = vld [vmem:[#allocation3 + $0x10] sm:$0xff]   ;;  %v460_v6 = vld [vmem:[#allocation3 + $0x58] sm:$0xff]   ;;  %v462_v8 = vld [vmem:[#allocation3 + $0x60] sm:$0xff]   ;;  %v374_v50 = vshrl.u32 %v373_v49, 7 }
  0x29   :  { %427 = vmatprep.subr.bf16.mxu0 %v456_v2  ;;  %v461_v7 = vld [vmem:[#allocation3 + $0x18] sm:$0xff]   ;;  %v463_v9 = vld [vmem:[#allocation3 + $0x20] sm:$0xff]   ;;  %v464_v10 = vld [vmem:[#allocation3 + $0x68] sm:$0xff]  }
  0x2a   :  { %v613_v11 = vld [vmem:[%s639_s3 + $0x8] sm:$0xff]  ;;  %v466_v16 = vld [vmem:[#allocation3 + $0x70] sm:$0xff]   ;;  %v468_v21 = vld [vmem:[#allocation3 + $0x78] sm:$0xff]   ;;  %v375_v51 = vsub.s32 0, %v374_v50  ;;  %v379_v53 = vsub.s32 1, %v374_v50 }
  0x2b   :  { %v465_v12 = vld [vmem:[#allocation3 + $0x28] sm:$0xff]   ;;  %v56_v13 = vpack.c.bf16 %v613_v11, %v613_v11  ;;  %v473_v17 = vld [vmem:[#allocation5 + $0x14] ss:$8 sps:$4 sm:$0xff]   ;;  %v475_v18 = vld [vmem:[#allocation5 + $0x10] ss:$8 sps:$4 sm:$0xff]  }
  0x2c   :  { %428 = vmatpush3.bf16.msra.mxu0 %v457_v3  ;;  %v470_v14 = vld [vmem:[#allocation5 + $0x4] ss:$8 sps:$4 sm:$0xff]   ;;  %v472_v15 = vld [vmem:[#allocation5] ss:$8 sps:$4 sm:$0xff]   ;;  %v467_v20 = vld [vmem:[#allocation3 + $0x30] sm:$0xff]  }
  0x2d   :  { %429 = vmatprep.subr.bf16.mxu0 %v458_v4  ;;  %219 = vmatprep.mubr.bf16.mxu0 %v56_v13  ;;  %v476_v19 = vld [vmem:[#allocation5 + $0x24] ss:$8 sps:$4 sm:$0xff]   ;;  %v469_v22 = vld [vmem:[#allocation3 + $0x38] sm:$0xff]   ;;  %v478_v25 = vld [vmem:[#allocation5 + $0x20] ss:$8 sps:$4 sm:$0xff]  }
  0x2e   :  { %328 = vmatprep.subr.bf16.mxu1 %v470_v14  ;;  %v53_v23 = vld [vmem:[%s639_s3] sm:$0xff]  ;;  %v479_v26 = vld [vmem:[#allocation5 + $0x34] ss:$8 sps:$4 sm:$0xff]   ;;  %v481_v27 = vld [vmem:[#allocation5 + $0x30] ss:$8 sps:$4 sm:$0xff]  }
  0x2f   :  { %329 = vmatpush1.bf16.msra.mxu1 %v472_v15  ;;  %v55_v24 = vpack.c.bf16 %v53_v23, %v53_v23  ;;  %v482_v28 = vld [vmem:[#allocation5 + $0x44] ss:$8 sps:$4 sm:$0xff]   ;;  %v484_v29 = vld [vmem:[#allocation5 + $0x40] ss:$8 sps:$4 sm:$0xff]   ;;  %v485_v30 = vld [vmem:[#allocation5 + $0x54] ss:$8 sps:$4 sm:$0xff]  }
  0x30   :  { %430 = vmatpush3.bf16.msra.mxu0 %v459_v5  ;;  %330 = vmatprep.subr.bf16.mxu1 %v473_v17  ;;  %v487_v31 = vld [vmem:[#allocation5 + $0x50] ss:$8 sps:$4 sm:$0xff]   ;;  %v488_v32 = vld [vmem:[#allocation5 + $0x64] ss:$8 sps:$4 sm:$0xff]   ;;  %v490_v34 = vld [vmem:[#allocation5 + $0x60] ss:$8 sps:$4 sm:$0xff]  }
  0x31   :  { %431 = vmatprep.subr.bf16.mxu0 %v460_v6  ;;  %v491_v35 = vld [vmem:[#allocation5 + $0x74] ss:$8 sps:$4 sm:$0xff]   ;;  %v493_v36 = vld [vmem:[#allocation5 + $0x70] ss:$8 sps:$4 sm:$0xff]   ;;  %v228_v45 = vld [vmem:[%s640_s4] sm:$0xff] }
  0x32   :  { %v371_v52 = vld [vmem:[%s638_s2] sm:$0x3] }
  0x33   :  { %331 = vmatpush1.bf16.msra.mxu1 %v475_v18  ;;  %v376_v54 = vrot.slane %v371_v52, %v375_v51  ;;  %v380_v56 = vrot.slane %v371_v52, %v379_v53 }
  0x34   :  { %432 = vmatpush3.bf16.msra.mxu0 %v461_v7  ;;  %332 = vmatprep.subr.bf16.mxu1 %v476_v19 }
  0x35   :  { %433 = vmatprep.subr.bf16.mxu0 %v462_v8 }
  0x37   :  { %333 = vmatpush1.bf16.msra.mxu1 %v478_v25 }
  0x38   :  { %434 = vmatpush3.bf16.msra.mxu0 %v463_v9  ;;  %334 = vmatprep.subr.bf16.mxu1 %v479_v26 }
  0x39   :  { %435 = vmatprep.subr.bf16.mxu0 %v464_v10 }
  0x3b   :  { %335 = vmatpush1.bf16.msra.mxu1 %v481_v27 }
  0x3c   :  { %436 = vmatpush3.bf16.msra.mxu0 %v465_v12  ;;  %336 = vmatprep.subr.bf16.mxu1 %v482_v28 }
  0x3d   :  { %437 = vmatprep.subr.bf16.mxu0 %v466_v16 }
  0x3f   :  { %337 = vmatpush1.bf16.msra.mxu1 %v484_v29 }
  0x40   :  { %438 = vmatpush3.bf16.msra.mxu0 %v467_v20  ;;  %338 = vmatprep.subr.bf16.mxu1 %v485_v30 }
  0x41   :  { %439 = vmatprep.subr.bf16.mxu0 %v468_v21 }
  0x43   :  { %339 = vmatpush1.bf16.msra.mxu1 %v487_v31 }
  0x44   :  { %440 = vmatpush3.bf16.msra.mxu0 %v469_v22  ;;  %340 = vmatprep.subr.bf16.mxu1 %v488_v32 }
  0x47   :  { %220 = vmatmul.mubr.bf16.vlgmr.msra.gmra.mrb[0].mxu0 %v55_v24  ;;  %341 = vmatpush1.bf16.msra.mxu1 %v490_v34 }
  0x48   :  { %342 = vmatprep.subr.bf16.mxu1 %v491_v35 }
  0x4b   :  { %343 = vmatpush1.bf16.msra.mxu1 %v493_v36 }
 0x11a   :  { %v441_v37 = vpop.f32.mrb[0].mxu0 }
 0x11b   :  { %v442_v39 = vpop.f32.mrb[1].mxu0 }
 0x11c   :  { %v443_v40 = vadd.f32 %v442_v39, %v441_v37  ;;  %v444_v41 = vpop.f32.mrb[2].mxu0 }
 0x11d   :  { %v445_v42 = vpop.f32.mrb[3].mxu0 }
 0x11e   :  { %v222_v43 = vadd.f32 %v443_v40, %v90_v38 }
 0x120   :  { %v227_v44 = vadd.f32 1e-11, %v222_v43 }
 0x122   :  { %494 = vrcp.f32 %v227_v44 }
 0x12c   :  { %v495_v46 = vpop.eup %494 }
 0x12d   :  { %v230_v47 = vmul.f32 %v495_v46, %v228_v45 }
 0x12f   :  { %v231_v48 = vpack.c.bf16 %v230_v47, %v230_v47 }
 0x131   :  { %361 = vmatmul.mubr.bf16.vlgmr.msra.gmra.mrb[0].mxu1 %v231_v48 }
 0x204   :  { %v362_v55 = vpop.f32.mrb[0].mxu1 }
 0x205   :  { %v369_v57 = vmul.f32 %v362_v55, %v53_v23  ;;  %v364_v58 = vpop.f32.mrb[1].mxu1 }
 0x206   :  { %v370_v59 = vmul.f32 %v364_v58, %v613_v11  ;;  %v366_v60 = vpop.f32.mrb[2].mxu1 }
 0x207   :  { %v383_v61 = vmul.f32 %v376_v54, %v369_v57  ;;  %v367_v62 = vpop.f32.mrb[3].mxu1 }
 0x208   :  { %v384_v63 = vmul.f32 %v380_v56, %v370_v59 }
 0x209   :  { %385 = vst [vmem:[%s642_s6] sm:$0xff] %v383_v61 }
 0x20a   :  { %386 = vst [vmem:[%s642_s6 + $0x8] sm:$0xff] %v384_v63 }
 0x20b   :  { %391 = vsyncpa [#allocation4], 1 }
 0x20c   :  { %392 = vsyncpa [#allocation6], 1 }

// kernel: _run_osem.5
= control target key start
LH: loop header
LB: loop body
LE: loop exit
PB: predicated region body
PF: predicated region fallthrough
CT: control target
= control target key end

     0   :  { %v460_v33 = vmov 0   ;;  %v345_v49 = vlaneseq  ;;  %s618_s0 = inlined_call_operand.vmem [shape: bf16[256,128], index: 0, kind: input, shape index: {}]   ;;  %s619_s3 = inlined_call_operand.vmem [shape: f32[8,256], index: 3, kind: input, shape index: {}, may-alias: {3,6}]   ;;  %s620_s1 = inlined_call_operand.vmem [shape: bf16[128,256], index: 1, kind: input, shape index: {}]   ;;  %s621_s5 = inlined_call_operand.<no memory space> [shape: f32[1], index: 5, kind: input, shape index: {}]   ;;  %s622_s4 = inlined_call_operand.vmem [shape: f32[8,128], index: 4, kind: input, shape index: {}]   ;;  %s623_s2 = inlined_call_operand.vmem [shape: f32[1,256], index: 2, kind: input, shape index: {}]   ;;  %s624_s6 = inlined_call_operand.vmem [shape: f32[8,256], index: 6, kind: output, shape index: {}, may-alias: {3,6}]  }
   0x1   :  { %v418_v0 = vld [vmem:[%s618_s0 + $0x40] sm:$0xff]   ;;  %v420_v2 = vld [vmem:[%s618_s0 + $0x48] sm:$0xff]   ;;  %v422_v4 = vld [vmem:[%s618_s0 + $0x50] sm:$0xff]   ;;  %332 = vmatprep.mubr.bf16.mxu1 %v460_v33  ;;  %v62_v38 = vstv %s621_s5 }
   0x2   :  { %v419_v1 = vld [vmem:[%s618_s0] sm:$0xff]   ;;  %395 = vmatprep.subr.bf16.mxu0 %v418_v0  ;;  %v421_v3 = vld [vmem:[%s618_s0 + $0x8] sm:$0xff]   ;;  %v423_v5 = vld [vmem:[%s618_s0 + $0x10] sm:$0xff]   ;;  %v346_v50 = vshrl.u32 %v345_v49, 7 }
   0x3   :  { %396 = vmatpush3.bf16.msra.mxu0 %v419_v1  ;;  %v424_v6 = vld [vmem:[%s618_s0 + $0x58] sm:$0xff]   ;;  %v426_v8 = vld [vmem:[%s618_s0 + $0x60] sm:$0xff]   ;;  %v428_v10 = vld [vmem:[%s618_s0 + $0x68] sm:$0xff]  }
   0x4   :  { %397 = vmatprep.subr.bf16.mxu0 %v420_v2  ;;  %v425_v7 = vld [vmem:[%s618_s0 + $0x18] sm:$0xff]   ;;  %v427_v9 = vld [vmem:[%s618_s0 + $0x20] sm:$0xff]   ;;  %v532_v11 = vld [vmem:[%s619_s3 + $0x8] sm:$0xff]  ;;  %v347_v51 = vsub.s32 0, %v346_v50  ;;  %v351_v53 = vsub.s32 1, %v346_v50 }
   0x5   :  { %v429_v12 = vld [vmem:[%s618_s0 + $0x28] sm:$0xff]   ;;  %v28_v13 = vpack.c.bf16 %v532_v11, %v532_v11  ;;  %v430_v16 = vld [vmem:[%s618_s0 + $0x70] sm:$0xff]   ;;  %v432_v21 = vld [vmem:[%s618_s0 + $0x78] sm:$0xff]  }
   0x6   :  { %v434_v14 = vld [vmem:[%s620_s1 + $0x4] ss:$8 sps:$4 sm:$0xff]   ;;  %v436_v15 = vld [vmem:[%s620_s1] ss:$8 sps:$4 sm:$0xff]   ;;  %v437_v17 = vld [vmem:[%s620_s1 + $0x14] ss:$8 sps:$4 sm:$0xff]  }
   0x7   :  { %398 = vmatpush3.bf16.msra.mxu0 %v421_v3  ;;  %191 = vmatprep.mubr.bf16.mxu0 %v28_v13  ;;  %v439_v18 = vld [vmem:[%s620_s1 + $0x10] ss:$8 sps:$4 sm:$0xff]   ;;  %v440_v19 = vld [vmem:[%s620_s1 + $0x24] ss:$8 sps:$4 sm:$0xff]   ;;  %v442_v25 = vld [vmem:[%s620_s1 + $0x20] ss:$8 sps:$4 sm:$0xff]  }
   0x8   :  { %399 = vmatprep.subr.bf16.mxu0 %v422_v4  ;;  %300 = vmatprep.subr.bf16.mxu1 %v434_v14  ;;  %v431_v20 = vld [vmem:[%s618_s0 + $0x30] sm:$0xff]   ;;  %v433_v22 = vld [vmem:[%s618_s0 + $0x38] sm:$0xff]   ;;  %v25_v23 = vld [vmem:[%s619_s3] sm:$0xff] }
   0x9   :  { %301 = vmatpush1.bf16.msra.mxu1 %v436_v15  ;;  %v27_v24 = vpack.c.bf16 %v25_v23, %v25_v23  ;;  %v443_v26 = vld [vmem:[%s620_s1 + $0x34] ss:$8 sps:$4 sm:$0xff]   ;;  %v445_v27 = vld [vmem:[%s620_s1 + $0x30] ss:$8 sps:$4 sm:$0xff]   ;;  %v446_v28 = vld [vmem:[%s620_s1 + $0x44] ss:$8 sps:$4 sm:$0xff]  }
   0xa   :  { %302 = vmatprep.subr.bf16.mxu1 %v437_v17  ;;  %v448_v29 = vld [vmem:[%s620_s1 + $0x40] ss:$8 sps:$4 sm:$0xff]   ;;  %v449_v30 = vld [vmem:[%s620_s1 + $0x54] ss:$8 sps:$4 sm:$0xff]   ;;  %v451_v31 = vld [vmem:[%s620_s1 + $0x50] ss:$8 sps:$4 sm:$0xff]  }
   0xb   :  { %400 = vmatpush3.bf16.msra.mxu0 %v423_v5  ;;  %v452_v32 = vld [vmem:[%s620_s1 + $0x64] ss:$8 sps:$4 sm:$0xff]   ;;  %v454_v34 = vld [vmem:[%s620_s1 + $0x60] ss:$8 sps:$4 sm:$0xff]   ;;  %v455_v35 = vld [vmem:[%s620_s1 + $0x74] ss:$8 sps:$4 sm:$0xff]  }
   0xc   :  { %401 = vmatprep.subr.bf16.mxu0 %v424_v6  ;;  %v457_v36 = vld [vmem:[%s620_s1 + $0x70] ss:$8 sps:$4 sm:$0xff]   ;;  %v200_v45 = vld [vmem:[%s622_s4] sm:$0xff] }
   0xd   :  { %303 = vmatpush1.bf16.msra.mxu1 %v439_v18  ;;  %v343_v52 = vld [vmem:[%s623_s2] sm:$0x3] }
   0xe   :  { %304 = vmatprep.subr.bf16.mxu1 %v440_v19  ;;  %v348_v54 = vrot.slane %v343_v52, %v347_v51  ;;  %v352_v56 = vrot.slane %v343_v52, %v351_v53 }
   0xf   :  { %402 = vmatpush3.bf16.msra.mxu0 %v425_v7 }
  0x10   :  { %403 = vmatprep.subr.bf16.mxu0 %v426_v8 }
  0x11   :  { %305 = vmatpush1.bf16.msra.mxu1 %v442_v25 }
  0x12   :  { %306 = vmatprep.subr.bf16.mxu1 %v443_v26 }
  0x13   :  { %404 = vmatpush3.bf16.msra.mxu0 %v427_v9 }
  0x14   :  { %405 = vmatprep.subr.bf16.mxu0 %v428_v10 }
  0x15   :  { %307 = vmatpush1.bf16.msra.mxu1 %v445_v27 }
  0x16   :  { %308 = vmatprep.subr.bf16.mxu1 %v446_v28 }
  0x17   :  { %406 = vmatpush3.bf16.msra.mxu0 %v429_v12 }
  0x18   :  { %407 = vmatprep.subr.bf16.mxu0 %v430_v16 }
  0x19   :  { %309 = vmatpush1.bf16.msra.mxu1 %v448_v29 }
  0x1a   :  { %310 = vmatprep.subr.bf16.mxu1 %v449_v30 }
  0x1b   :  { %408 = vmatpush3.bf16.msra.mxu0 %v431_v20 }
  0x1c   :  { %409 = vmatprep.subr.bf16.mxu0 %v432_v21 }
  0x1d   :  { %311 = vmatpush1.bf16.msra.mxu1 %v451_v31 }
  0x1e   :  { %312 = vmatprep.subr.bf16.mxu1 %v452_v32 }
  0x1f   :  { %410 = vmatpush3.bf16.msra.mxu0 %v433_v22 }
  0x21   :  { %313 = vmatpush1.bf16.msra.mxu1 %v454_v34 }
  0x22   :  { %192 = vmatmul.mubr.bf16.vlgmr.msra.gmra.mrb[0].mxu0 %v27_v24  ;;  %314 = vmatprep.subr.bf16.mxu1 %v455_v35 }
  0x25   :  { %315 = vmatpush1.bf16.msra.mxu1 %v457_v36 }
  0xf5   :  { %v411_v37 = vpop.f32.mrb[0].mxu0 }
  0xf6   :  { %v412_v39 = vpop.f32.mrb[1].mxu0 }
  0xf7   :  { %v413_v40 = vadd.f32 %v412_v39, %v411_v37  ;;  %v414_v41 = vpop.f32.mrb[2].mxu0 }
  0xf8   :  { %v415_v42 = vpop.f32.mrb[3].mxu0 }
  0xf9   :  { %v194_v43 = vadd.f32 %v413_v40, %v62_v38 }
  0xfb   :  { %v199_v44 = vadd.f32 1e-11, %v194_v43 }
  0xfd   :  { %458 = vrcp.f32 %v199_v44 }
 0x107   :  { %v459_v46 = vpop.eup %458 }
 0x108   :  { %v202_v47 = vmul.f32 %v459_v46, %v200_v45 }
 0x10a   :  { %v203_v48 = vpack.c.bf16 %v202_v47, %v202_v47 }
 0x10c   :  { %333 = vmatmul.mubr.bf16.vlgmr.msra.gmra.mrb[0].mxu1 %v203_v48 }
 0x1df   :  { %v334_v55 = vpop.f32.mrb[0].mxu1 }
 0x1e0   :  { %v341_v57 = vmul.f32 %v334_v55, %v25_v23  ;;  %v336_v58 = vpop.f32.mrb[1].mxu1 }
 0x1e1   :  { %v342_v59 = vmul.f32 %v336_v58, %v532_v11  ;;  %v338_v60 = vpop.f32.mrb[2].mxu1 }
 0x1e2   :  { %v355_v61 = vmul.f32 %v348_v54, %v341_v57  ;;  %v339_v62 = vpop.f32.mrb[3].mxu1 }
 0x1e3   :  { %v356_v63 = vmul.f32 %v352_v56, %v342_v59 }
 0x1e4   :  { %357 = vst [vmem:[%s624_s6] sm:$0xff] %v355_v61 }
 0x1e5   :  { %358 = vst [vmem:[%s624_s6 + $0x8] sm:$0xff] %v356_v63 }

</bundles_post_ra>
